<compile_context>
chip_gen: v7x
topology: tpu7x:2x2x1
jax: 0.10.0
libtpu: 0.0.40
codegen_flags: <defaults>
</compile_context>

<pallas_src>
import functools

import jax
import jax.numpy as jnp
from jax.experimental import pallas as pl
from jax.experimental.pallas import tpu as pltpu

_LANE = 128


def _round_up(n, m):
    return ((n + m - 1) // m) * m


def _vmem_cap_bytes():
    """Physical VMEM capacity (falls back to the v7x per-TC 64 MiB)."""
    try:
        return int(pltpu.get_tpu_info().vmem_capacity_bytes)
    except Exception:
        return 64 << 20


# ---------------------------------------------------------------------------
# One-time parameter preparation (keeps the per-call wrapper free of HBM passes)
# ---------------------------------------------------------------------------
def prepare_params(w0, b0, wh, bh):
    """Convert f32 (in, out)-layout params once:
      * weights -> bf16 (MXU feed), biases stay f32 (VPU add),
      * hidden dim zero-padded to a multiple of 128 lanes so every matmul N
        dim and the output store are lane-dense.
    Returns a dict consumed by neural_net_forward."""
    hidden = w0.shape[1]
    hidden_pad = _round_up(hidden, _LANE)
    hp = hidden_pad - hidden
    n_extra = wh.shape[0]

    if hp:
        w0 = jnp.pad(w0, ((0, 0), (0, hp)))
        b0 = jnp.pad(b0, ((0, 0), (0, hp)))
        if n_extra:
            wh = jnp.pad(wh, ((0, 0), (0, hp), (0, hp)))
            bh = jnp.pad(bh, ((0, 0), (0, 0), (0, hp)))

    return dict(
        w0=w0.astype(jnp.bfloat16),
        b0=b0.astype(jnp.float32),
        wh=wh.astype(jnp.bfloat16),
        bh=bh.astype(jnp.float32),
        hidden=hidden,
        hidden_pad=hidden_pad,
        n_extra=n_extra,
    )


# ---------------------------------------------------------------------------
# Kernels
# ---------------------------------------------------------------------------
def _mlp_resident_kernel(x_ref, w0_ref, b0_ref, *rest, n_extra):
    """Whole MLP on one batch tile; all weights resident in VMEM.

    x_ref : (TM, D_in)  f32  (cast to bf16 in-register)
    w0_ref: (D_in, Hp)  bf16 (resident, single-buffered)
    b0_ref: (1, Hp)     f32  (resident)
    wh_ref: (L, Hp, Hp) bf16 (resident, only if n_extra > 0)
    bh_ref: (L, 1, Hp)  f32  (resident, only if n_extra > 0)
    o_ref : (TM, Hp)
    """
    if n_extra > 0:
        wh_ref, bh_ref, o_ref = rest
    else:
        (o_ref,) = rest

    h = jnp.dot(x_ref[...].astype(jnp.bfloat16), w0_ref[...],
                preferred_element_type=jnp.float32)
    h = jnp.maximum(h + b0_ref[...], 0.0)

    for l in range(n_extra):            # static unroll; n_extra is small
        h = jnp.dot(h.astype(jnp.bfloat16), wh_ref[l],
                    preferred_element_type=jnp.float32)
        h = jnp.maximum(h + bh_ref[l], 0.0)

    o_ref[...] = h.astype(o_ref.dtype)


def _mlp_stream_kernel(x_ref, w0_ref, b0_ref, wh_ref, bh_ref, o_ref, h_ref):
    """Weight-streaming variant: grid = (batch tiles, extra layers).

    The (Hp, Hp) hidden weights are streamed one layer per grid step (auto
    double-buffered by Pallas), the running activation lives in VMEM scratch,
    and the output tile is written only on the last layer step.  Keeps the
    weight VMEM footprint at ~2*Hp*Hp*2B regardless of extra_layers (needed
    on v7x's 64 MiB/TC for large hidden sizes)."""
    l = pl.program_id(1)

    @pl.when(l == 0)
    def _():
        h0 = jnp.dot(x_ref[...].astype(jnp.bfloat16), w0_ref[...],
                     preferred_element_type=jnp.float32)
        h_ref[...] = jnp.maximum(h0 + b0_ref[...], 0.0)

    h = jnp.dot(h_ref[...].astype(jnp.bfloat16), wh_ref[0],
                preferred_element_type=jnp.float32)
    h_ref[...] = jnp.maximum(h + bh_ref[0], 0.0)

    @pl.when(l == pl.num_programs(1) - 1)
    def _():
        o_ref[...] = h_ref[...].astype(o_ref.dtype)


# ---------------------------------------------------------------------------
# Wrapper
# ---------------------------------------------------------------------------
def _flatten_like_torch(x):
    n_channels_in = x.shape[1]
    if n_channels_in > 1:
        return x.reshape(-1, x.shape[-1] ** 2 * n_channels_in)
    return x.reshape(-1, x.shape[-1] ** 2)


def _pick_batch_tile(B, d_in, hidden_pad, resident_bytes, budget_bytes):
    """Batch tile: large enough to amortize per-step overhead and fill the
    256-wide MXU (256-512 rows), >=2 tiles when B allows (v7x megacore),
    shrunk if the double-buffered x/out tiles would blow the VMEM budget."""
    if B <= 256:
        tm = B                                     # single tile, full-dim block
    else:
        tm = min(512, _round_up(pl.cdiv(B, 2), 16))

    def est(t):
        # 2x-buffered f32 x tile + 2x-buffered out tile + activation slack
        return (resident_bytes + 2 * t * d_in * 4
                + 2 * t * hidden_pad * 4 + 4 * t * hidden_pad * 4)

    while tm > 64 and est(tm) > budget_bytes:
        tm = max(64, _round_up(tm // 2, 16))
    return tm


def neural_net_forward(x, params, *, out_dtype=jnp.float32, force_stream=None):
    """x: (B, C, S, S) float32 NCHW.  params: output of prepare_params().
    Returns (B, hidden) in out_dtype (pass jnp.bfloat16 to halve the output
    writeback if downstream tolerates it)."""
    x_flat = _flatten_like_torch(x)               # metadata-only reshape
    B, d_in = x_flat.shape

    w0, b0, wh, bh = params["w0"], params["b0"], params["wh"], params["bh"]
    hidden, hidden_pad = params["hidden"], params["hidden_pad"]
    n_extra = params["n_extra"]
    assert w0.shape[0] == d_in, "input spatial/channel shape mismatch vs params"
    # TODO(synk): if d_in is not a multiple of 128 the first matmul's K loads
    # are masked; emit a lane-aligned d_in upstream if that shows in traces.

    vmem_cap = _vmem_cap_bytes()
    budget = int(vmem_cap * 0.75)

    resident_bytes = w0.size * 2 + b0.size * 4 + wh.size * 2 + bh.size * 4
    # Stream hidden-layer weights when keeping everything resident would crowd
    # VMEM (v7x: 64 MiB/TC, and megacore duplicates resident blocks per core).
    stream = (n_extra > 0) and (resident_bytes > min(budget // 2, 28 << 20))
    if force_stream is not None:
        stream = bool(force_stream) and n_extra > 0

    if stream:
        res_for_tile = (w0.size * 2 + b0.size * 4
                        + 2 * hidden_pad * hidden_pad * 2      # 2x wh block
                        + 2 * hidden_pad * 4)                   # 2x bh block
    else:
        res_for_tile = resident_bytes

    tm = _pick_batch_tile(B, d_in, hidden_pad, res_for_tile, budget)
    num_tiles = pl.cdiv(B, tm)

    out_itemsize = jnp.dtype(out_dtype).itemsize
    vmem_need = (res_for_tile + 2 * tm * d_in * 4
                 + 2 * tm * hidden_pad * out_itemsize
                 + 4 * tm * hidden_pad * 4 + (4 << 20))
    vmem_limit = int(min(max(vmem_need, 32 << 20), int(vmem_cap * 0.85)))

    flops = 2 * B * d_in * hidden_pad + 2 * B * n_extra * hidden_pad * hidden_pad
    out_shape = jax.ShapeDtypeStruct((B, hidden_pad), out_dtype)

    if not stream:
        kernel = functools.partial(_mlp_resident_kernel, n_extra=n_extra)
        in_specs = [
            pl.BlockSpec((tm, d_in), lambda i: (i, 0)),
            pl.BlockSpec((d_in, hidden_pad), lambda i: (0, 0),
                         pipeline_mode=pl.Buffered(1)),
            pl.BlockSpec((1, hidden_pad), lambda i: (0, 0),
                         pipeline_mode=pl.Buffered(1)),
        ]
        operands = [x_flat, w0, b0]
        if n_extra > 0:
            in_specs += [
                pl.BlockSpec((n_extra, hidden_pad, hidden_pad),
                             lambda i: (0, 0, 0), pipeline_mode=pl.Buffered(1)),
                pl.BlockSpec((n_extra, 1, hidden_pad),
                             lambda i: (0, 0, 0), pipeline_mode=pl.Buffered(1)),
            ]
            operands += [wh, bh]

        bytes_accessed = (x_flat.size * 4 + w0.size * 2 + b0.size * 4
                          + wh.size * 2 + bh.size * 4
                          + B * hidden_pad * out_itemsize)
        out = pl.pallas_call(
            kernel,
            out_shape=out_shape,
            grid=(num_tiles,),
            in_specs=in_specs,
            out_specs=pl.BlockSpec((tm, hidden_pad), lambda i: (i, 0)),
            compiler_params=pltpu.CompilerParams(
                dimension_semantics=("parallel",),
                vmem_limit_bytes=vmem_limit,
            ),
            cost_estimate=pl.CostEstimate(
                flops=flops, transcendentals=0, bytes_accessed=bytes_accessed),
        )(*operands)
    else:
        in_specs = [
            pl.BlockSpec((tm, d_in), lambda i, l: (i, 0)),          # resident per-i
            pl.BlockSpec((d_in, hidden_pad), lambda i, l: (0, 0),
                         pipeline_mode=pl.Buffered(1)),
            pl.BlockSpec((1, hidden_pad), lambda i, l: (0, 0),
                         pipeline_mode=pl.Buffered(1)),
            pl.BlockSpec((1, hidden_pad, hidden_pad), lambda i, l: (l, 0, 0)),
            pl.BlockSpec((1, 1, hidden_pad), lambda i, l: (l, 0, 0)),
        ]
        bytes_accessed = (x_flat.size * 4 + w0.size * 2 + b0.size * 4
                          + num_tiles * (wh.size * 2 + bh.size * 4)
                          + B * hidden_pad * out_itemsize)
        out = pl.pallas_call(
            _mlp_stream_kernel,
            out_shape=out_shape,
            grid=(num_tiles, n_extra),
            in_specs=in_specs,
            out_specs=pl.BlockSpec((tm, hidden_pad), lambda i, l: (i, 0)),
            scratch_shapes=[pltpu.VMEM((tm, hidden_pad), jnp.float32)],
            compiler_params=pltpu.CompilerParams(
                dimension_semantics=("parallel", "arbitrary"),
                vmem_limit_bytes=vmem_limit,
            ),
            cost_estimate=pl.CostEstimate(
                flops=flops, transcendentals=0, bytes_accessed=bytes_accessed),
        )(x_flat, w0, b0, wh, bh)

    if hidden_pad != hidden:
        out = out[:, :hidden]
    return out


# ---------------------------------------------------------------------------
# Init + references
# ---------------------------------------------------------------------------
def init_params(key, input_size, hidden_size, extra_layers, n_channels_in=1):
    """PyTorch nn.Linear default init (U(-1/sqrt(fan_in), +1/sqrt(fan_in))),
    weights stored as (in, out), f32."""
    d_in = input_size * n_channels_in
    keys = jax.random.split(key, 2 + 2 * max(extra_layers, 1))

    bound0 = 1.0 / jnp.sqrt(d_in)
    w0 = jax.random.uniform(keys[0], (d_in, hidden_size),
                            minval=-bound0, maxval=bound0, dtype=jnp.float32)
    b0 = jax.random.uniform(keys[1], (1, hidden_size),
                            minval=-bound0, maxval=bound0, dtype=jnp.float32)

    boundh = 1.0 / jnp.sqrt(hidden_size)
    wh_list, bh_list = [], []
    for l in range(extra_layers):
        wh_list.append(jax.random.uniform(
            keys[2 + 2 * l], (hidden_size, hidden_size),
            minval=-boundh, maxval=boundh, dtype=jnp.float32))
        bh_list.append(jax.random.uniform(
            keys[3 + 2 * l], (1, hidden_size),
            minval=-boundh, maxval=boundh, dtype=jnp.float32))
    if extra_layers > 0:
        wh = jnp.stack(wh_list, axis=0)                 # (L, H, H)
        bh = jnp.stack(bh_list, axis=0)                 # (L, 1, H)
    else:
        wh = jnp.zeros((0, hidden_size, hidden_size), jnp.float32)
        bh = jnp.zeros((0, 1, hidden_size), jnp.float32)
    return w0, b0, wh, bh


def reference_forward_f32(x, w0, b0, wh, bh):
    """Plain-JAX f32 reference matching the PyTorch forward."""
    h = _flatten_like_torch(x)
    h = jnp.maximum(h @ w0 + b0, 0.0)
    for l in range(wh.shape[0]):
        h = jnp.maximum(h @ wh[l] + bh[l], 0.0)
    return h


def reference_forward_bf16(x, params):
    """Reference emulating the kernel's bf16-matmul / f32-accumulate path."""
    h = _flatten_like_torch(x).astype(jnp.bfloat16)
    h = jnp.dot(h, params["w0"], preferred_element_type=jnp.float32)
    h = jnp.maximum(h + params["b0"], 0.0)
    for l in range(params["n_extra"]):
        h = jnp.dot(h.astype(jnp.bfloat16), params["wh"][l],
                    preferred_element_type=jnp.float32)
        h = jnp.maximum(h + params["bh"][l], 0.0)
    return h[:, :params["hidden"]]


if __name__ == "__main__":
    # Small shapes consistent with the module:
    #   batch=8, n_channels_in=4, spatial=16 -> input_size = 16*16 = 256,
    #   flattened d_in = 256*4 = 1024; hidden_size = 128; extra_layers = 2.
    B, C, S = 8, 4, 16
    input_size = S * S
    hidden_size = 128
    extra_layers = 2

    key = jax.random.PRNGKey(0)
    kx, kp = jax.random.split(key)
    x = jax.random.normal(kx, (B, C, S, S), dtype=jnp.float32)

    w0, b0, wh, bh = init_params(kp, input_size, hidden_size,
                                 extra_layers, n_channels_in=C)

    # One-time parameter prep (bf16 weights + lane padding) -- NOT per call.
    params = prepare_params(w0, b0, wh, bh)

    # Resident-weight path (auto-selected at these sizes).
    out = neural_net_forward(x, params)
    out = jax.block_until_ready(out)
    assert out.shape == (B, hidden_size)

    # Weight-streaming path (v7x / large-model fallback), forced here to
    # exercise it at small shapes.
    out_stream = neural_net_forward(x, params, force_stream=True)
    out_stream = jax.block_until_ready(out_stream)
    assert out_stream.shape == (B, hidden_size)

    ref_bf16 = reference_forward_bf16(x, params)
    ref_f32 = reference_forward_f32(x, w0, b0, wh, bh)

    assert jnp.allclose(out, ref_bf16, atol=2e-3, rtol=2e-3), \
        "resident path mismatch vs bf16-emulating reference"
    assert jnp.allclose(out_stream, ref_bf16, atol=2e-3, rtol=2e-3), \
        "streaming path mismatch vs bf16-emulating reference"
    assert jnp.allclose(out, ref_f32, atol=3e-2, rtol=3e-2), \
        "mismatch vs f32 (PyTorch-semantics) reference"

    print("KERNEL_OK")
</pallas_src>

<mosaic_0001>
module attributes {stable_mosaic.version = 11 : i64} {
  func.func @_mlp_resident_kernel(%arg0: i32, %arg1: memref<8x1024xf32, #tpu.memory_space<vmem>>, %arg2: memref<1024x128xbf16, #tpu.memory_space<vmem>>, %arg3: memref<1x128xf32, #tpu.memory_space<vmem>>, %arg4: memref<2x128x128xbf16, #tpu.memory_space<vmem>>, %arg5: memref<2x1x128xf32, #tpu.memory_space<vmem>>, %arg6: memref<8x128xf32, #tpu.memory_space<vmem>>) attributes {dimension_semantics = [#tpu.dimension_semantics<parallel>], iteration_bounds = array<i64: 1>, scalar_prefetch = 0 : i64, scratch_operands = 0 : i64, tpu.core_type = #tpu.core_type<tc>, window_params = [{transform_indices = @transform_0, window_bounds = array<i64: 8, 1024>}, {pipeline_mode = #tpu.pipeline_mode<synchronous>, transform_indices = @transform_1, window_bounds = array<i64: 1024, 128>}, {pipeline_mode = #tpu.pipeline_mode<synchronous>, transform_indices = @transform_2, window_bounds = array<i64: 1, 128>}, {pipeline_mode = #tpu.pipeline_mode<synchronous>, transform_indices = @transform_3, window_bounds = array<i64: 2, 128, 128>}, {pipeline_mode = #tpu.pipeline_mode<synchronous>, transform_indices = @transform_4, window_bounds = array<i64: 2, 1, 128>}, {transform_indices = @transform_5, window_bounds = array<i64: 8, 128>}]} {
    %c0 = arith.constant 0 : index
    %c0_0 = arith.constant 0 : index
    %0 = vector.load %arg1[%c0, %c0_0] : memref<8x1024xf32, #tpu.memory_space<vmem>>, vector<8x1024xf32>
    %1 = arith.truncf %0 : vector<8x1024xf32> to vector<8x1024xbf16>
    %c0_1 = arith.constant 0 : index
    %c0_2 = arith.constant 0 : index
    %2 = vector.load %arg2[%c0_1, %c0_2] : memref<1024x128xbf16, #tpu.memory_space<vmem>>, vector<1024x128xbf16>
    %cst = arith.constant dense<0.000000e+00> : vector<8x128xf32>
    %3 = tpu.matmul %1, %2, %cst {dimension_numbers = #tpu.dot_dimension_numbers<[1], [0], [0], [1], [0, 0, 1, 1], [], []>} : vector<8x1024xbf16>, vector<1024x128xbf16>, vector<8x128xf32> -> vector<8x128xf32>
    %c0_3 = arith.constant 0 : index
    %c0_4 = arith.constant 0 : index
    %4 = vector.load %arg3[%c0_3, %c0_4] : memref<1x128xf32, #tpu.memory_space<vmem>>, vector<1x128xf32>
    %5 = vector.broadcast %4 : vector<1x128xf32> to vector<8x128xf32>
    %6 = arith.addf %3, %5 : vector<8x128xf32>
    %cst_5 = arith.constant 0.000000e+00 : f32
    %7 = vector.broadcast %cst_5 : f32 to vector<8x128xf32>
    %8 = arith.maximumf %6, %7 : vector<8x128xf32>
    %9 = arith.truncf %8 : vector<8x128xf32> to vector<8x128xbf16>
    %c0_6 = arith.constant 0 : index
    %c0_7 = arith.constant 0 : index
    %c0_8 = arith.constant 0 : index
    %10 = vector.load %arg4[%c0_6, %c0_7, %c0_8] : memref<2x128x128xbf16, #tpu.memory_space<vmem>>, vector<1x128x128xbf16>
    %11 = vector.shape_cast %10 : vector<1x128x128xbf16> to vector<128x128xbf16>
    %cst_9 = arith.constant dense<0.000000e+00> : vector<8x128xf32>
    %12 = tpu.matmul %9, %11, %cst_9 {dimension_numbers = #tpu.dot_dimension_numbers<[1], [0], [0], [1], [0, 0, 1, 1], [], []>} : vector<8x128xbf16>, vector<128x128xbf16>, vector<8x128xf32> -> vector<8x128xf32>
    %c0_10 = arith.constant 0 : index
    %c0_11 = arith.constant 0 : index
    %c0_12 = arith.constant 0 : index
    %13 = vector.load %arg5[%c0_10, %c0_11, %c0_12] : memref<2x1x128xf32, #tpu.memory_space<vmem>>, vector<1x1x128xf32>
    %14 = vector.shape_cast %13 : vector<1x1x128xf32> to vector<1x128xf32>
    %15 = vector.broadcast %14 : vector<1x128xf32> to vector<8x128xf32>
    %16 = arith.addf %12, %15 : vector<8x128xf32>
    %cst_13 = arith.constant 0.000000e+00 : f32
    %17 = vector.broadcast %cst_13 : f32 to vector<8x128xf32>
    %18 = arith.maximumf %16, %17 : vector<8x128xf32>
    %19 = arith.truncf %18 : vector<8x128xf32> to vector<8x128xbf16>
    %c1 = arith.constant 1 : index
    %c0_14 = arith.constant 0 : index
    %c0_15 = arith.constant 0 : index
    %20 = vector.load %arg4[%c1, %c0_14, %c0_15] : memref<2x128x128xbf16, #tpu.memory_space<vmem>>, vector<1x128x128xbf16>
    %21 = vector.shape_cast %20 : vector<1x128x128xbf16> to vector<128x128xbf16>
    %cst_16 = arith.constant dense<0.000000e+00> : vector<8x128xf32>
    %22 = tpu.matmul %19, %21, %cst_16 {dimension_numbers = #tpu.dot_dimension_numbers<[1], [0], [0], [1], [0, 0, 1, 1], [], []>} : vector<8x128xbf16>, vector<128x128xbf16>, vector<8x128xf32> -> vector<8x128xf32>
    %c1_17 = arith.constant 1 : index
    %c0_18 = arith.constant 0 : index
    %c0_19 = arith.constant 0 : index
    %23 = vector.load %arg5[%c1_17, %c0_18, %c0_19] : memref<2x1x128xf32, #tpu.memory_space<vmem>>, vector<1x1x128xf32>
    %24 = vector.shape_cast %23 : vector<1x1x128xf32> to vector<1x128xf32>
    %25 = vector.broadcast %24 : vector<1x128xf32> to vector<8x128xf32>
    %26 = arith.addf %22, %25 : vector<8x128xf32>
    %cst_20 = arith.constant 0.000000e+00 : f32
    %27 = vector.broadcast %cst_20 : f32 to vector<8x128xf32>
    %28 = arith.maximumf %26, %27 : vector<8x128xf32>
    %c0_21 = arith.constant 0 : index
    %c0_22 = arith.constant 0 : index
    %29 = vector.load %arg6[%c0_21, %c0_22] : memref<8x128xf32, #tpu.memory_space<vmem>>, vector<8x128xf32>
    tpu.vector_store %arg6[%c0_21, %c0_22], %28 {strides = array<i32>} : memref<8x128xf32, #tpu.memory_space<vmem>>, vector<8x128xf32>,
    return
  }
  func.func @transform_0(%arg0: i32) -> (i32, i32) {
    %c0_i32 = arith.constant 0 : i32
    %c0_i32_0 = arith.constant 0 : i32
    return %arg0, %c0_i32 : i32, i32
  }
  func.func @transform_1(%arg0: i32) -> (i32, i32) {
    %c0_i32 = arith.constant 0 : i32
    %c0_i32_0 = arith.constant 0 : i32
    %c0_i32_1 = arith.constant 0 : i32
    return %c0_i32, %c0_i32_0 : i32, i32
  }
  func.func @transform_2(%arg0: i32) -> (i32, i32) {
    %c0_i32 = arith.constant 0 : i32
    %c0_i32_0 = arith.constant 0 : i32
    %c0_i32_1 = arith.constant 0 : i32
    return %c0_i32, %c0_i32_0 : i32, i32
  }
  func.func @transform_3(%arg0: i32) -> (i32, i32, i32) {
    %c0_i32 = arith.constant 0 : i32
    %c0_i32_0 = arith.constant 0 : i32
    %c0_i32_1 = arith.constant 0 : i32
    %c0_i32_2 = arith.constant 0 : i32
    return %c0_i32, %c0_i32_0, %c0_i32_1 : i32, i32, i32
  }
  func.func @transform_4(%arg0: i32) -> (i32, i32, i32) {
    %c0_i32 = arith.constant 0 : i32
    %c0_i32_0 = arith.constant 0 : i32
    %c0_i32_1 = arith.constant 0 : i32
    %c0_i32_2 = arith.constant 0 : i32
    return %c0_i32, %c0_i32_0, %c0_i32_1 : i32, i32, i32
  }
  func.func @transform_5(%arg0: i32) -> (i32, i32) {
    %c0_i32 = arith.constant 0 : i32
    %c0_i32_0 = arith.constant 0 : i32
    return %arg0, %c0_i32 : i32, i32
  }
}

</mosaic_0001>

<bundles_post_ra>
// kernel: tpu_custom_call.1
= control target key start
LH: loop header
LB: loop body
LE: loop exit
PB: predicated region body
PF: predicated region fallthrough
CT: control target
= control target key end

     0   :  { %10 = vsyncpa [#allocation3], 0  ;;  %s1533_s0 = inlined_call_operand.hbm [shape: f32[8,1024], index: 0, kind: input, shape index: {}]   ;;  %s1534_s1 = inlined_call_operand.hbm [shape: bf16[1024,128], index: 1, kind: input, shape index: {}]   ;;  %s1535_s2 = inlined_call_operand.vmem [shape: f32[1,128], index: 2, kind: input, shape index: {}]   ;;  %s1536_s3 = inlined_call_operand.hbm [shape: bf16[2,128,128], index: 3, kind: input, shape index: {}]   ;;  %s1537_s4 = inlined_call_operand.vmem [shape: f32[2,1,128], index: 4, kind: input, shape index: {}]   ;;  %s1538_s5 = inlined_call_operand.hbm [shape: f32[8,128], index: 5, kind: output, shape index: {}]  }
   0x1   :  { %11 = vsyncpa [#allocation6], 0 }
   0x2   :  { %12 = vsyncpa [#allocation4], 0  ;;  %s1414_s18 = smov [#allocation5]   ;;  %s1320_s22 = scalar_lea.hbm %s1534_s1, 8192 }
   0x3   :  { %s28_s19 = sshll.u32 %s1414_s18, 4  ;;  %p1321_p0 = scmp.ne.s32.totalorder %s1534_s1, %s1320_s22  ;;  %s29_s19 = int_to_ptr.vmem [resolvable:$true] %s28_s19 }
   0x4   :  { %p1324_p1 = scmp.lt.u32.totalorder %s1320_s22, %s1534_s1 }
   0x6   :  { %p1326_p2 = pnand %p1324_p1, %p1321_p0 }
   0x8   :  { %1329 = shalt.err (!%p1326_p2)
}
   0x9   :  { %s1330_s27 = scalar_lea.vmem %s29_s19, 8192  ;;  %p1335_p4 = scmp.lt.s32.totalorder %s29_s19, %s29_s19 }
   0xa   :  { %p1331_p3 = scmp.ne.s32.totalorder %s29_s19, %s1330_s27  ;;  %p1336_p5 = scmp.lt.s32.totalorder %s1330_s27, %s1330_s27 }
   0xc   :  { %p1337_p6 = por %p1336_p5, %p1335_p4 }
   0xe   :  { %p1338_p7 = pnand %p1337_p6, %p1331_p3 }
  0x10   :  { %1341 = shalt.err (!%p1338_p7)
}
  0x11   :  { %s1415_s28 = smov 64   ;;  %s1416_s29 = smov 4  }
  0x12   :  { %34 = dma.hbm_to_vmem [thread:$0]  %s1534_s1, 8192, %s29_s19, [#allocation6], %s1415_s28, %s1415_s28, %s1416_s29  }
  0x13   :  { %s1417_s7 = smov [#allocation2]   ;;  %s1418_s9 = smov [#allocation7]  }
  0x14   :  { %s19_s8 = sshll.u32 %s1417_s7, 4  ;;  %s42_s10 = sshll.u32 %s1418_s9, 4  ;;  %s20_s8 = int_to_ptr.vmem [resolvable:$true] %s19_s8  ;;  %s43_s10 = int_to_ptr.vmem [resolvable:$true] %s42_s10 }
  0x15   :  { %s1342_s13 = scalar_lea.hbm %s1533_s0, 1024 }
  0x16   :  { %p1343_p8 = scmp.ne.s32.totalorder %s1533_s0, %s1342_s13  ;;  %p1346_p9 = scmp.lt.u32.totalorder %s1342_s13, %s1533_s0 }
  0x18   :  { %p1348_p10 = pnand %p1346_p9, %p1343_p8 }
  0x1a   :  { %1351 = shalt.err (!%p1348_p10)
}
  0x1b   :  { %s1352_s1 = scalar_lea.vmem %s20_s8, 1024  ;;  %p1357_p12 = scmp.lt.s32.totalorder %s20_s8, %s20_s8 }
  0x1c   :  { %p1353_p11 = scmp.ne.s32.totalorder %s20_s8, %s1352_s1  ;;  %p1358_p13 = scmp.lt.s32.totalorder %s1352_s1, %s1352_s1 }
  0x1e   :  { %p1359_p0 = por %p1358_p13, %p1357_p12 }
  0x20   :  { %p1360_p1 = pnand %p1359_p0, %p1353_p11 }
  0x22   :  { %1363 = shalt.err (!%p1360_p1)
}
  0x23   :  { %22 = dma.hbm_to_vmem [thread:$0]  %s1533_s0, 1024, %s20_s8, [#allocation3]  }
  0x24   :  { %s1364_s22 = scalar_lea.hbm %s1536_s3, 2048 }
  0x25   :  { %p1365_p2 = scmp.ne.s32.totalorder %s1536_s3, %s1364_s22  ;;  %p1368_p3 = scmp.lt.u32.totalorder %s1364_s22, %s1536_s3 }
  0x27   :  { %p1370_p4 = pnand %p1368_p3, %p1365_p2 }
  0x29   :  { %1373 = shalt.err (!%p1370_p4)
}
  0x2a   :  { %s1374_s27 = scalar_lea.vmem %s43_s10, 2048  ;;  %p1379_p6 = scmp.lt.s32.totalorder %s43_s10, %s43_s10 }
  0x2b   :  { %p1375_p5 = scmp.ne.s32.totalorder %s43_s10, %s1374_s27  ;;  %p1380_p7 = scmp.lt.s32.totalorder %s1374_s27, %s1374_s27 }
  0x2d   :  { %p1381_p8 = por %p1380_p7, %p1379_p6 }
  0x2f   :  { %p1382_p9 = pnand %p1381_p8, %p1375_p5 }
  0x31   :  { %1385 = shalt.err (!%p1382_p9)
}
  0x32   :  { %48 = dma.hbm_to_vmem [thread:$0]  %s1536_s3, 2048, %s43_s10, [#allocation6], %s1415_s28, %s1415_s28, %s1416_s29  }
  0x33   :  { %1408 = dma.done.wait [#allocation3], 1024  }
  0x34   :  { %1409 = vsyncadd [#allocation3], 4294966272 }
  0x35   :  { %1410 = dma.done.wait [#allocation6], 10240  }
  0x36   :  { %1411 = vsyncadd [#allocation6], 4294957056  ;;  %v1240_v0 = vld [vmem:[#allocation5 + $0x40] sm:$0xff]   ;;  %v1244_v4 = vld [vmem:[#allocation5 + $0x48] sm:$0xff]   ;;  %vm1420_vm0 = vmmov 0   ;;  %s1421_s8 = smov [#allocation8]  }
  0x37   :  { %v1241_v1 = vld [vmem:[#allocation5 + $0xc0] sm:$0xff]   ;;  %1086 = vmatprep.subr.bf16.mxu0 %v1240_v0  ;;  %v1245_v5 = vld [vmem:[#allocation5 + $0xc8] sm:$0xff]   ;;  %v1248_v8 = vld [vmem:[#allocation5 + $0x50] sm:$0xff]   ;;  %s992_s9 = sshll.u32 %s1421_s8, 4  ;;  %s993_s9 = int_to_ptr.vmem [resolvable:$true] %s992_s9 }
  0x38   :  { %v1242_v2 = vld [vmem:[#allocation5] sm:$0xff]   ;;  %1108 = vmatprep.subr.bf16.mxu1 %v1241_v1  ;;  %v1246_v6 = vld [vmem:[#allocation5 + $0x8] sm:$0xff]   ;;  %v1249_v9 = vld [vmem:[#allocation5 + $0xd0] sm:$0xff]   ;;  %s1386_s10 = scalar_lea.vmem %s993_s9, 128  ;;  %p1391_p11 = scmp.lt.s32.totalorder %s993_s9, %s993_s9 }
  0x39   :  { %v1243_v3 = vld [vmem:[#allocation5 + $0x80] sm:$0xff]   ;;  %1087 = vmatpush3.bf16.msra.mxu0 %v1242_v2  ;;  %v1247_v7 = vld [vmem:[#allocation5 + $0x88] sm:$0xff]   ;;  %v1250_v10 = vld [vmem:[#allocation5 + $0x10] sm:$0xff]   ;;  %p1387_p10 = scmp.ne.s32.totalorder %s993_s9, %s1386_s10  ;;  %p1392_p12 = scmp.lt.s32.totalorder %s1386_s10, %s1386_s10 }
  0x3a   :  { %1109 = vmatpush3.bf16.msra.mxu1 %v1243_v3  ;;  %1088 = vmatprep.subr.bf16.mxu0 %v1244_v4  ;;  %v1251_v11 = vld [vmem:[#allocation5 + $0x90] sm:$0xff]   ;;  %v1252_v12 = vld [vmem:[#allocation5 + $0x58] sm:$0xff]   ;;  %v1256_v16 = vld [vmem:[#allocation5 + $0x60] sm:$0xff]  }
  0x3b   :  { %1110 = vmatprep.subr.bf16.mxu1 %v1245_v5  ;;  %v1253_v13 = vld [vmem:[#allocation5 + $0xd8] sm:$0xff]   ;;  %v1257_v17 = vld [vmem:[#allocation5 + $0xe0] sm:$0xff]   ;;  %v1260_v20 = vld [vmem:[#allocation5 + $0x68] sm:$0xff]   ;;  %p1393_p13 = por %p1392_p12, %p1391_p11 }
  0x3c   :  { %v1254_v14 = vld [vmem:[#allocation5 + $0x18] sm:$0xff]   ;;  %v1258_v18 = vld [vmem:[#allocation5 + $0x20] sm:$0xff]   ;;  %v1261_v21 = vld [vmem:[#allocation5 + $0xe8] sm:$0xff]  }
  0x3d   :  { %1089 = vmatpush3.bf16.msra.mxu0 %v1246_v6  ;;  %v1255_v15 = vld [vmem:[#allocation5 + $0x98] sm:$0xff]   ;;  %v1259_v19 = vld [vmem:[#allocation5 + $0xa0] sm:$0xff]   ;;  %v1262_v22 = vld [vmem:[#allocation5 + $0x28] sm:$0xff]   ;;  %p1394_p0 = pnand %p1393_p13, %p1387_p10 }
  0x3e   :  { %1111 = vmatpush3.bf16.msra.mxu1 %v1247_v7  ;;  %1090 = vmatprep.subr.bf16.mxu0 %v1248_v8  ;;  %v1263_v23 = vld [vmem:[#allocation5 + $0xa8] sm:$0xff]   ;;  %v1264_v24 = vld [vmem:[#allocation5 + $0x70] sm:$0xff]   ;;  %v1268_v28 = vld [vmem:[#allocation5 + $0x78] sm:$0xff]  }
  0x3f   :  { %1112 = vmatprep.subr.bf16.mxu1 %v1249_v9  ;;  %v1265_v25 = vld [vmem:[#allocation5 + $0xf0] sm:$0xff]   ;;  %v1269_v29 = vld [vmem:[#allocation5 + $0xf8] sm:$0xff]   ;;  %v62_v32 = vld [vmem:[#allocation2 + $0x8] sm:$0xff] }
  0x40   :  { %v1266_v26 = vld [vmem:[#allocation5 + $0x30] sm:$0xff]   ;;  %v1270_v30 = vld [vmem:[#allocation5 + $0x38] sm:$0xff]   ;;  %v61_v34 = vld [vmem:[#allocation2] sm:$0xff]  ;;  %v70_v35 = vpack.c.bf16 %v62_v32, %v62_v32 }
  0x41   :  { %1091 = vmatpush3.bf16.msra.mxu0 %v1250_v10  ;;  %v1267_v27 = vld [vmem:[#allocation5 + $0xb0] sm:$0xff]   ;;  %v1271_v31 = vld [vmem:[#allocation5 + $0xb8] sm:$0xff]   ;;  %v69_v37 = vpack.c.bf16 %v61_v34, %v61_v34  ;;  %v1272_v40 = vld [vmem:[#allocation5 + $0x140] sm:$0xff]  }
  0x42   :  { %1113 = vmatpush3.bf16.msra.mxu1 %v1251_v11  ;;  %1092 = vmatprep.subr.bf16.mxu0 %v1252_v12  ;;  %v64_v33 = vld [vmem:[#allocation2 + $0x18] sm:$0xff]  ;;  %v63_v38 = vld [vmem:[#allocation2 + $0x10] sm:$0xff]  ;;  %v1273_v41 = vld [vmem:[#allocation5 + $0x1c0] sm:$0xff]  }
  0x43   :  { %1114 = vmatprep.subr.bf16.mxu1 %v1253_v13  ;;  %v72_v36 = vpack.c.bf16 %v64_v33, %v64_v33  ;;  %v71_v39 = vpack.c.bf16 %v63_v38, %v63_v38  ;;  %628 = vmatprep.mubr.bf16.mxu0 %v70_v35  ;;  %v1274_v42 = vld [vmem:[#allocation5 + $0x100] sm:$0xff]   ;;  %v1276_v44 = vld [vmem:[#allocation5 + $0x148] sm:$0xff]   ;;  %v1280_v48 = vld [vmem:[#allocation5 + $0x150] sm:$0xff]  }
  0x44   :  { %v1275_v43 = vld [vmem:[#allocation5 + $0x180] sm:$0xff]   ;;  %v1277_v45 = vld [vmem:[#allocation5 + $0x1c8] sm:$0xff]   ;;  %v1281_v49 = vld [vmem:[#allocation5 + $0x1d0] sm:$0xff]  }
  0x45   :  { %1093 = vmatpush3.bf16.msra.mxu0 %v1254_v14  ;;  %668 = vmatprep.mubr.bf16.mxu1 %v72_v36  ;;  %v1278_v46 = vld [vmem:[#allocation5 + $0x108] sm:$0xff]   ;;  %v1282_v50 = vld [vmem:[#allocation5 + $0x110] sm:$0xff]   ;;  %v1284_v52 = vld [vmem:[#allocation5 + $0x158] sm:$0xff]  }
  0x46   :  { %1115 = vmatpush3.bf16.msra.mxu1 %v1255_v15  ;;  %1094 = vmatprep.subr.bf16.mxu0 %v1256_v16  ;;  %v1279_v47 = vld [vmem:[#allocation5 + $0x188] sm:$0xff]   ;;  %v1283_v51 = vld [vmem:[#allocation5 + $0x190] sm:$0xff]   ;;  %v1285_v53 = vld [vmem:[#allocation5 + $0x1d8] sm:$0xff]  }
  0x47   :  { %1116 = vmatprep.subr.bf16.mxu1 %v1257_v17  ;;  %v1286_v54 = vld [vmem:[#allocation5 + $0x118] sm:$0xff]   ;;  %v1288_v56 = vld [vmem:[#allocation5 + $0x160] sm:$0xff]   ;;  %v1292_v60 = vld [vmem:[#allocation5 + $0x168] sm:$0xff]   ;;  %v1419_v17 = vmov 0.0  }
  0x48   :  { %v1287_v55 = vld [vmem:[#allocation5 + $0x198] sm:$0xff]   ;;  %v1289_v57 = vld [vmem:[#allocation5 + $0x1e0] sm:$0xff]   ;;  %v1293_v61 = vld [vmem:[#allocation5 + $0x1e8] sm:$0xff]  }
  0x49   :  { %1095 = vmatpush3.bf16.msra.mxu0 %v1258_v18  ;;  %v1290_v58 = vld [vmem:[#allocation5 + $0x120] sm:$0xff]   ;;  %v1294_v62 = vld [vmem:[#allocation5 + $0x128] sm:$0xff]   ;;  %v1296_v0 = vld [vmem:[#allocation5 + $0x170] sm:$0xff]  }
  0x4a   :  { %1117 = vmatpush3.bf16.msra.mxu1 %v1259_v19  ;;  %1096 = vmatprep.subr.bf16.mxu0 %v1260_v20  ;;  %v1291_v59 = vld [vmem:[#allocation5 + $0x1a0] sm:$0xff]   ;;  %v1295_v63 = vld [vmem:[#allocation5 + $0x1a8] sm:$0xff]   ;;  %v1297_v1 = vld [vmem:[#allocation5 + $0x1f0] sm:$0xff]  }
  0x4b   :  { %1118 = vmatprep.subr.bf16.mxu1 %v1261_v21  ;;  %v1298_v2 = vld [vmem:[#allocation5 + $0x130] sm:$0xff]   ;;  %v1300_v4 = vld [vmem:[#allocation5 + $0x178] sm:$0xff]   ;;  %v66_v8 = vld [vmem:[#allocation2 + $0x28] sm:$0xff] }
  0x4c   :  { %v1299_v3 = vld [vmem:[#allocation5 + $0x1b0] sm:$0xff]   ;;  %v1301_v5 = vld [vmem:[#allocation5 + $0x1f8] sm:$0xff]   ;;  %v74_v10 = vpack.c.bf16 %v66_v8, %v66_v8  ;;  %v65_v12 = vld [vmem:[#allocation2 + $0x20] sm:$0xff] }
  0x4d   :  { %1097 = vmatpush3.bf16.msra.mxu0 %v1262_v22  ;;  %v1302_v6 = vld [vmem:[#allocation5 + $0x138] sm:$0xff]   ;;  %v67_v13 = vld [vmem:[#allocation2 + $0x30] sm:$0xff]  ;;  %v73_v14 = vpack.c.bf16 %v65_v12, %v65_v12  ;;  %v1304_v16 = vld [vmem:[#allocation7] sm:$0xff]  }
  0x4e   :  { %1119 = vmatpush3.bf16.msra.mxu1 %v1263_v23  ;;  %1098 = vmatprep.subr.bf16.mxu0 %v1264_v24  ;;  %v1303_v7 = vld [vmem:[#allocation5 + $0x1b8] sm:$0xff]   ;;  %v75_v15 = vpack.c.bf16 %v67_v13, %v67_v13  ;;  %v1305_v18 = vld [vmem:[#allocation7 + $0x8] sm:$0xff]   ;;  %v1306_v19 = vld [vmem:[#allocation7 + $0x10] sm:$0xff]  }
  0x4f   :  { %1120 = vmatprep.subr.bf16.mxu1 %v1265_v25  ;;  %v68_v9 = vld [vmem:[#allocation2 + $0x38] sm:$0xff]  ;;  %v1308_v21 = vld [vmem:[#allocation7 + $0x20] sm:$0xff]   ;;  %v1309_v22 = vld [vmem:[#allocation7 + $0x28] sm:$0xff]  }
  0x50   :  { %v76_v11 = vpack.c.bf16 %v68_v9, %v68_v9  ;;  %v1307_v20 = vld [vmem:[#allocation7 + $0x18] sm:$0xff]   ;;  %v1310_v23 = vld [vmem:[#allocation7 + $0x30] sm:$0xff]   ;;  %v1312_v25 = vld [vmem:[#allocation7 + $0x40] sm:$0xff]  }
  0x51   :  { %1099 = vmatpush3.bf16.msra.mxu0 %v1266_v26  ;;  %v1311_v24 = vld [vmem:[#allocation7 + $0x38] sm:$0xff]   ;;  %v1313_v26 = vld [vmem:[#allocation7 + $0x48] sm:$0xff]   ;;  %v1002_v33 = vld [vmem:[%s1535_s2] ss:$0 sm:$0xff] }
  0x52   :  { %1121 = vmatpush3.bf16.msra.mxu1 %v1267_v27  ;;  %1100 = vmatprep.subr.bf16.mxu0 %v1268_v28  ;;  %v1314_v27 = vld [vmem:[#allocation7 + $0x50] sm:$0xff]   ;;  %v1315_v28 = vld [vmem:[#allocation7 + $0x58] sm:$0xff]  }
  0x53   :  { %1122 = vmatprep.subr.bf16.mxu1 %v1269_v29  ;;  %v1316_v29 = vld [vmem:[#allocation7 + $0x60] sm:$0xff]  }
  0x55   :  { %1101 = vmatpush3.bf16.msra.mxu0 %v1270_v30  ;;  %v1317_v30 = vld [vmem:[#allocation7 + $0x68] sm:$0xff]  }
  0x56   :  { %1123 = vmatpush3.bf16.msra.mxu1 %v1271_v31  ;;  %1130 = vmatprep.subr.bf16.mxu0 %v1272_v40 }
  0x57   :  { %1152 = vmatprep.subr.bf16.mxu1 %v1273_v41 }
  0x58   :  { %629 = vmatmul.mubr.bf16.vlgmr.msra.gmra.mrb[0].mxu0 %v69_v37 }
  0x59   :  { %669 = vmatmul.mubr.bf16.vlgmr.msra.gmra.mrb[0].mxu1 %v71_v39  ;;  %1131 = vmatpush3.bf16.msra.mxu0 %v1274_v42 }
  0x5a   :  { %1153 = vmatpush3.bf16.msra.mxu1 %v1275_v43  ;;  %1132 = vmatprep.subr.bf16.mxu0 %v1276_v44 }
  0x5b   :  { %1154 = vmatprep.subr.bf16.mxu1 %v1277_v45  ;;  %708 = vmatprep.mubr.bf16.mxu0 %v74_v10 }
  0x5c   :  { %748 = vmatprep.mubr.bf16.mxu1 %v76_v11 }
  0x5d   :  { %1133 = vmatpush3.bf16.msra.mxu0 %v1278_v46 }
  0x5e   :  { %1155 = vmatpush3.bf16.msra.mxu1 %v1279_v47  ;;  %1134 = vmatprep.subr.bf16.mxu0 %v1280_v48 }
  0x5f   :  { %1156 = vmatprep.subr.bf16.mxu1 %v1281_v49 }
  0x61   :  { %1135 = vmatpush3.bf16.msra.mxu0 %v1282_v50 }
  0x62   :  { %1157 = vmatpush3.bf16.msra.mxu1 %v1283_v51  ;;  %1136 = vmatprep.subr.bf16.mxu0 %v1284_v52 }
  0x63   :  { %1158 = vmatprep.subr.bf16.mxu1 %v1285_v53 }
  0x65   :  { %1137 = vmatpush3.bf16.msra.mxu0 %v1286_v54 }
  0x66   :  { %1159 = vmatpush3.bf16.msra.mxu1 %v1287_v55  ;;  %1138 = vmatprep.subr.bf16.mxu0 %v1288_v56 }
  0x67   :  { %1160 = vmatprep.subr.bf16.mxu1 %v1289_v57 }
  0x69   :  { %1139 = vmatpush3.bf16.msra.mxu0 %v1290_v58  ;;  %v1318_v58 = vld [vmem:[#allocation7 + $0x70] sm:$0xff]  }
  0x6a   :  { %1161 = vmatpush3.bf16.msra.mxu1 %v1291_v59  ;;  %1140 = vmatprep.subr.bf16.mxu0 %v1292_v60  ;;  %v1319_v59 = vld [vmem:[#allocation7 + $0x78] sm:$0xff]   ;;  %v1067_v60 = vld [vmem:[%s1537_s4] ss:$0 sm:$0xff] }
  0x6b   :  { %1162 = vmatprep.subr.bf16.mxu1 %v1293_v61 }
  0x6d   :  { %1141 = vmatpush3.bf16.msra.mxu0 %v1294_v62 }
  0x6e   :  { %1163 = vmatpush3.bf16.msra.mxu1 %v1295_v63  ;;  %1142 = vmatprep.subr.bf16.mxu0 %v1296_v0 }
  0x6f   :  { %1164 = vmatprep.subr.bf16.mxu1 %v1297_v1 }
  0x71   :  { %1143 = vmatpush3.bf16.msra.mxu0 %v1298_v2 }
  0x72   :  { %1165 = vmatpush3.bf16.msra.mxu1 %v1299_v3  ;;  %1144 = vmatprep.subr.bf16.mxu0 %v1300_v4  ;;  %v1077_v4 = vld [vmem:[%s1537_s4 + $0x1] ss:$0 sm:$0xff] }
  0x73   :  { %1166 = vmatprep.subr.bf16.mxu1 %v1301_v5 }
  0x75   :  { %1145 = vmatpush3.bf16.msra.mxu0 %v1302_v6 }
  0x76   :  { %1167 = vmatpush3.bf16.msra.mxu1 %v1303_v7  ;;  %1192 = vmatprep.subr.bf16.mxu0 %v1419_v17 }
  0x77   :  { %1212 = vmatprep.subr.bf16.mxu1 %v1419_v17 }
  0x78   :  { %709 = vmatmul.mubr.bf16.vlgmr.msra.gmra.mrb[4].mxu0 %v73_v14 }
  0x79   :  { %749 = vmatmul.mubr.bf16.vlgmr.msra.gmra.mrb[4].mxu1 %v75_v15  ;;  %1193 = vmatpush3.bf16.msra.mxu0 %v1304_v16 }
  0x7a   :  { %1194 = vmatprep.subr.bf16.mxu0 %v1419_v17  ;;  %1208 = vmatprep.mubr.msk.bf16.mxu0 %vm1420_vm0, %v1419_v17 }
  0x7b   :  { %1228 = vmatprep.mubr.msk.bf16.mxu1 %vm1420_vm0, %v1419_v17  ;;  %1213 = vmatpush3.bf16.msra.mxu1 %v1312_v25 }
  0x7c   :  { %1214 = vmatprep.subr.bf16.mxu1 %v1419_v17 }
  0x7d   :  { %1195 = vmatpush3.bf16.msra.mxu0 %v1305_v18 }
  0x7e   :  { %1196 = vmatprep.subr.bf16.mxu0 %v1419_v17 }
  0x7f   :  { %1215 = vmatpush3.bf16.msra.mxu1 %v1313_v26 }
  0x80   :  { %1216 = vmatprep.subr.bf16.mxu1 %v1419_v17 }
  0x81   :  { %1197 = vmatpush3.bf16.msra.mxu0 %v1306_v19 }
  0x82   :  { %1198 = vmatprep.subr.bf16.mxu0 %v1419_v17 }
  0x83   :  { %1217 = vmatpush3.bf16.msra.mxu1 %v1314_v27 }
  0x84   :  { %1218 = vmatprep.subr.bf16.mxu1 %v1419_v17 }
  0x85   :  { %1199 = vmatpush3.bf16.msra.mxu0 %v1307_v20 }
  0x86   :  { %1200 = vmatprep.subr.bf16.mxu0 %v1419_v17 }
  0x87   :  { %1219 = vmatpush3.bf16.msra.mxu1 %v1315_v28 }
  0x88   :  { %1220 = vmatprep.subr.bf16.mxu1 %v1419_v17 }
  0x89   :  { %1201 = vmatpush3.bf16.msra.mxu0 %v1308_v21 }
  0x8a   :  { %1202 = vmatprep.subr.bf16.mxu0 %v1419_v17 }
  0x8b   :  { %1221 = vmatpush3.bf16.msra.mxu1 %v1316_v29 }
  0x8c   :  { %1222 = vmatprep.subr.bf16.mxu1 %v1419_v17 }
  0x8d   :  { %1203 = vmatpush3.bf16.msra.mxu0 %v1309_v22 }
  0x8e   :  { %1204 = vmatprep.subr.bf16.mxu0 %v1419_v17 }
  0x8f   :  { %1223 = vmatpush3.bf16.msra.mxu1 %v1317_v30 }
  0x90   :  { %1224 = vmatprep.subr.bf16.mxu1 %v1419_v17 }
  0x91   :  { %1205 = vmatpush3.bf16.msra.mxu0 %v1310_v23 }
  0x92   :  { %1206 = vmatprep.subr.bf16.mxu0 %v1419_v17 }
  0x93   :  { %1225 = vmatpush3.bf16.msra.mxu1 %v1318_v58 }
  0x94   :  { %1226 = vmatprep.subr.bf16.mxu1 %v1419_v17 }
  0x95   :  { %1207 = vmatpush3.bf16.msra.mxu0 %v1311_v24 }
  0x97   :  { %1227 = vmatpush3.bf16.msra.mxu1 %v1319_v59 }
 0x12b   :  { %v1102_v31 = vpop.f32.mrb[0].mxu0 }
 0x12c   :  { %v1124_v32 = vpop.f32.mrb[0].mxu1  ;;  %v1103_v34 = vpop.f32.mrb[1].mxu0 }
 0x12d   :  { %v1125_v35 = vpop.f32.mrb[1].mxu1  ;;  %v1104_v36 = vadd.f32 %v1103_v34, %v1102_v31  ;;  %v1105_v38 = vpop.f32.mrb[2].mxu0 }
 0x12e   :  { %v1126_v37 = vadd.f32 %v1125_v35, %v1124_v32  ;;  %v1127_v39 = vpop.f32.mrb[2].mxu1  ;;  %v1106_v40 = vpop.f32.mrb[3].mxu0 }
 0x12f   :  { %v1128_v41 = vpop.f32.mrb[3].mxu1  ;;  %v631_v42 = vadd.f32 %v1104_v36, %v1002_v33 }
 0x131   :  { %v671_v43 = vadd.f32 %v1126_v37, %v631_v42 }
 0x14b   :  { %v1146_v44 = vpop.f32.mrb[4].mxu0 }
 0x14c   :  { %v1168_v45 = vpop.f32.mrb[4].mxu1  ;;  %v1147_v46 = vpop.f32.mrb[5].mxu0 }
 0x14d   :  { %v1148_v47 = vadd.f32 %v1147_v46, %v1146_v44  ;;  %v1169_v48 = vpop.f32.mrb[5].mxu1  ;;  %v1149_v49 = vpop.f32.mrb[6].mxu0 }
 0x14e   :  { %v1170_v50 = vadd.f32 %v1169_v48, %v1168_v45  ;;  %v1171_v51 = vpop.f32.mrb[6].mxu1  ;;  %v1150_v52 = vpop.f32.mrb[7].mxu0 }
 0x14f   :  { %v711_v53 = vadd.f32 %v1148_v47, %v671_v43  ;;  %v1172_v54 = vpop.f32.mrb[7].mxu1 }
 0x151   :  { %v751_v55 = vadd.f32 %v1170_v50, %v711_v53 }
 0x153   :  { %v756_v56 = vmax.f32 %v751_v55, 0.0 }
 0x155   :  { %v757_v57 = vpack.c.bf16 %v756_v56, %v756_v56 }
 0x157   :  { %1209 = vmatmul.mubr.bf16.vlgmr.msra.gmra.mrb[8].mxu0 %v757_v57 }
 0x22a   :  { %v863_v61 = vpop.f32.mrb[8].mxu0 }
 0x22b   :  { %v864_v62 = vadd.f32 %v1067_v60, %v863_v61  ;;  %v1210_v63 = vpop.f32.mrb[9].mxu0 }
 0x22c   :  { %v866_v0 = vpop.f32.mrb[10].mxu0 }
 0x22d   :  { %v869_v1 = vmax.f32 %v864_v62, 0.0  ;;  %v1211_v2 = vpop.f32.mrb[11].mxu0 }
 0x22f   :  { %v870_v3 = vpack.c.bf16 %v869_v1, %v869_v1 }
 0x231   :  { %1229 = vmatmul.mubr.bf16.vlgmr.msra.gmra.mrb[8].mxu1 %v870_v3 }
 0x304   :  { %v978_v5 = vpop.f32.mrb[8].mxu1 }
 0x305   :  { %v979_v6 = vadd.f32 %v1077_v4, %v978_v5  ;;  %v1230_v7 = vpop.f32.mrb[9].mxu1 }
 0x306   :  { %v981_v8 = vpop.f32.mrb[10].mxu1 }
 0x307   :  { %v984_v9 = vmax.f32 %v979_v6, 0.0  ;;  %v1231_v10 = vpop.f32.mrb[11].mxu1 }
 0x309   :  { %985 = vst [vmem:[#allocation8] sm:$0xff] %v984_v9 }
 0x30a   :  { %1397 = shalt.err (!%p1394_p0)
}
 0x30b   :  { %s1398_s4 = scalar_lea.hbm %s1538_s5, 128 }
 0x30c   :  { %p1399_p1 = scmp.ne.s32.totalorder %s1538_s5, %s1398_s4  ;;  %p1402_p2 = scmp.lt.u32.totalorder %s1398_s4, %s1538_s5 }
 0x30e   :  { %p1404_p3 = pnand %p1402_p2, %p1399_p1 }
 0x310   :  { %1407 = shalt.err (!%p1404_p3)
}
 0x311   :  { %995 = dma.vmem_to_hbm [thread:$0]  %s993_s9, 128, %s1538_s5, [#allocation4]  }
 0x312   :  { %1412 = dma.done.wait [#allocation4], 128  }
 0x313   :  { %1413 = vsyncadd [#allocation4], 4294967168 }
 0x314   :  { %999 = vsyncpa [#allocation3], 1 }
 0x315   :  { %1000 = vsyncpa [#allocation6], 1 }
 0x316   :  { %1001 = vsyncpa [#allocation4], 1 }

</bundles_post_ra>
